<compile_context>
chip_gen: v5e
topology: v5e:2x2
jax: 0.10.0
libtpu: 0.0.40
codegen_flags: <defaults>
</compile_context>

<pallas_src>
import functools
from typing import NamedTuple

import jax
import jax.numpy as jnp
from jax.experimental import pallas as pl
from jax.experimental.pallas import tpu as pltpu


# ---------------------------------------------------------------------------
# Tiling / budgeting helpers
# ---------------------------------------------------------------------------
class _Plan(NamedTuple):
    tb: int          # batch (M) tile
    tk: int          # start_dim (K) tile
    b_pad: int       # padded batch
    k_pad: int       # padded start_dim
    dims: tuple      # dimension_semantics
    vmem_limit: int  # vmem_limit_bytes


def _vmem_capacity_bytes():
    """Per-TensorCore VMEM capacity (128 MiB on v5e/v6e, 64 MiB on v7x)."""
    try:
        info = pltpu.get_tpu_info()
        cap = int(getattr(info, "vmem_capacity_bytes", 0))
        if cap > 0:
            return cap
    except Exception:
        pass
    return 64 * 1024 * 1024  # conservative fallback: v7x per-TC VMEM


def _plan(B, start_dim, hid_dim, out_dim, act_bytes, w_bytes, *, with_y,
          tb=None, tk=None):
    cap = _vmem_capacity_bytes()
    vmem_limit = int(cap * 0.85)        # ~109 MiB on v5e/v6e, ~54 MiB on v7x
    budget = int(vmem_limit * 0.90)     # working budget with headroom

    # Constant-index tensors (W2, biases). Budgeted double-buffered so the plan
    # stays valid even if the Buffered(1) single-buffer request falls back.
    fixed = (2 * hid_dim * out_dim * w_bytes
             + 4 * (hid_dim + out_dim) * max(w_bytes, 4))

    def bytes_for(tb_, tk_):
        b = fixed
        b += 2 * tb_ * tk_ * act_bytes           # x tile (double-buffered)
        b += 2 * tk_ * hid_dim * w_bytes         # W1 tile (double-buffered)
        b += tb_ * hid_dim * 4                   # f32 accumulator scratch
        b += 2 * tb_ * max(out_dim, 128) * 4     # output / logit block
        if with_y:
            b += 2 * tb_ * out_dim * 4           # resident clip-vec block
            b += tb_ * 128 * 4                   # ||y||^2 scratch (lane-padded)
        return b

    tk_floor = min(start_dim, 128)

    # --- batch (M) tile: largest that fits => fewest HBM passes over W1 ------
    if tb is None:
        tb_ = None
        for cand in [B] + [t for t in (2048, 1024, 512, 256, 128, 64, 32, 16, 8)
                           if t < B]:
            if bytes_for(cand, tk_floor) <= budget:
                tb_ = cand
                break
        if tb_ is None:
            tb_ = 8
    else:
        assert tb == B or tb % 8 == 0, "tb must equal B or be a multiple of 8"
        tb_ = tb
    b_pad = B if tb_ == B else -(-B // tb_) * tb_

    # --- start_dim (K) tile: full K if it fits, else largest 128-multiple ----
    if tk is None:
        if bytes_for(tb_, start_dim) <= budget:
            tk_, k_pad = start_dim, start_dim
        else:
            tk_ = 128
            for cand in (16384, 8192, 4096, 2048, 1024, 512, 256, 128):
                if bytes_for(tb_, cand) <= budget:
                    tk_ = cand
                    break
            k_pad = -(-start_dim // tk_) * tk_
    else:
        assert tk == start_dim or tk % 128 == 0, \
            "tk must equal start_dim or be a multiple of 128"
        tk_ = tk
        k_pad = start_dim if tk_ == start_dim else -(-start_dim // tk_) * tk_

    nbt = b_pad // tb_
    # W1 is re-streamed once per batch tile, so for mem-bound (small/medium B)
    # cases do NOT shard the batch axis across v7x's 2 TensorCores (each core
    # would DMA its own copy of W1).  Only mark it parallel for big-batch runs.
    batch_sem = "parallel" if (nbt > 1 and B >= 1024) else "arbitrary"
    return _Plan(tb_, tk_, b_pad, k_pad, (batch_sem, "arbitrary"), vmem_limit)


def _cost_estimate(B, start_dim, hid_dim, out_dim, act_bytes, w_bytes, nbt,
                   transcendentals=0):
    flops = 2 * B * (start_dim * hid_dim + hid_dim * out_dim)
    bytes_accessed = (B * start_dim * act_bytes               # x streamed once
                      + nbt * start_dim * hid_dim * w_bytes   # W1 once per batch tile
                      + hid_dim * out_dim * w_bytes           # W2 fetched once
                      + (hid_dim + out_dim) * w_bytes         # biases
                      + 2 * B * out_dim * 4)                  # y / y_pred / logits
    return pl.CostEstimate(flops=int(flops),
                           transcendentals=int(transcendentals),
                           bytes_accessed=int(bytes_accessed))


def _const_spec_factory(single_buffer):
    """BlockSpec maker for constant-index inputs (W2, b1, b2)."""
    if single_buffer:
        def make(shape, index_map):
            return pl.BlockSpec(shape, index_map, pipeline_mode=pl.Buffered(1))
    else:
        def make(shape, index_map):
            return pl.BlockSpec(shape, index_map)
    return make


# ---------------------------------------------------------------------------
# Kernel 1: fused 2-layer MLP  (nn.Linear(start_dim, hid) -> nn.Linear(hid, 512))
# K (start_dim) is the reduction grid axis; acc_ref is the f32 accumulator.
# Activations are cast to the weight dtype in VMEM (no HBM cast round trip).
# ---------------------------------------------------------------------------
def _two_fc_kernel(x_ref, w1_ref, b1_ref, w2_ref, b2_ref, o_ref, acc_ref):
    k = pl.program_id(1)

    @pl.when(k == 0)
    def _():
        acc_ref[...] = jnp.zeros_like(acc_ref)

    acc_ref[...] += jnp.dot(x_ref[...].astype(w1_ref.dtype), w1_ref[...],
                            preferred_element_type=jnp.float32)

    @pl.when(k == pl.num_programs(1) - 1)
    def _():
        h = acc_ref[...] + b1_ref[...].astype(jnp.float32)            # (tb, hid) f32
        o = jnp.dot(h.astype(w2_ref.dtype), w2_ref[...],
                    preferred_element_type=jnp.float32)
        o_ref[...] = (o + b2_ref[...].astype(jnp.float32)).astype(o_ref.dtype)


# ---------------------------------------------------------------------------
# Kernel 2: MLP fused with contrastive logits
#   z_i = cos_sim(y_i, y_pred_i) / T   (written lane-dense, broadcast over 128 lanes)
#   loss = mean(-log_softmax(z, 0)) = logsumexp(z) - mean(z)   (done in the wrapper)
# ||y||^2 is computed in the k==0 prologue (hidden under the K-loop DMAs).
# ---------------------------------------------------------------------------
def _two_fc_cos_kernel(x_ref, y_ref, w1_ref, b1_ref, w2_ref, b2_ref,
                       z_ref, acc_ref, nyy_ref, *, inv_temperature):
    k = pl.program_id(1)

    @pl.when(k == 0)
    def _():
        acc_ref[...] = jnp.zeros_like(acc_ref)
        y0 = y_ref[...].astype(jnp.float32)
        nyy_ref[...] = jnp.sum(y0 * y0, axis=1, keepdims=True)        # (tb, 1)

    acc_ref[...] += jnp.dot(x_ref[...].astype(w1_ref.dtype), w1_ref[...],
                            preferred_element_type=jnp.float32)

    @pl.when(k == pl.num_programs(1) - 1)
    def _():
        h = acc_ref[...] + b1_ref[...].astype(jnp.float32)
        yp = jnp.dot(h.astype(w2_ref.dtype), w2_ref[...],
                     preferred_element_type=jnp.float32)
        yp = yp + b2_ref[...].astype(jnp.float32)                     # (tb, 512) f32
        y = y_ref[...].astype(jnp.float32)
        dot = jnp.sum(y * yp, axis=1, keepdims=True)                  # (tb, 1)
        npp = jnp.sum(yp * yp, axis=1, keepdims=True)
        # rsqrt -> EUP slot; fold 1/T into a multiply.  The reference module
        # divides by the raw norm product (no eps clamp), so we match it exactly.
        z = dot * jax.lax.rsqrt(nyy_ref[...] * npp) * inv_temperature  # (tb, 1)
        z_ref[...] = jnp.broadcast_to(z, z_ref.shape)                  # lane-dense store


# ---------------------------------------------------------------------------
# Wrappers
# ---------------------------------------------------------------------------
def fmri_clip_2fc_forward(fmri, w1, b1, w2, b2, *, tb=None, tk=None):
    """return_loss=False path: y_pred = Linear2(Linear1(fmri)); fmri: (B, start_dim).
    For the bf16 MXU fast path pre-cast the weights ONCE with cast_params()."""
    B, start_dim = fmri.shape
    hid_dim = w1.shape[1]
    out_dim = w2.shape[1]
    out_dtype = fmri.dtype
    act_bytes = jnp.dtype(fmri.dtype).itemsize
    w_bytes = jnp.dtype(w1.dtype).itemsize

    plan = _plan(B, start_dim, hid_dim, out_dim, act_bytes, w_bytes,
                 with_y=False, tb=tb, tk=tk)
    nbt = plan.b_pad // plan.tb
    nkt = plan.k_pad // plan.tk

    x, w1p = fmri, w1
    if plan.b_pad != B:
        x = jnp.pad(x, ((0, plan.b_pad - B), (0, 0)))
    if plan.k_pad != start_dim:
        x = jnp.pad(x, ((0, 0), (0, plan.k_pad - start_dim)))
        w1p = jnp.pad(w1, ((0, plan.k_pad - start_dim), (0, 0)))
    b1r = jnp.asarray(b1).reshape(1, hid_dim)
    b2r = jnp.asarray(b2).reshape(1, out_dim)

    def _run(single_buffer_consts):
        const = _const_spec_factory(single_buffer_consts)
        return pl.pallas_call(
            _two_fc_kernel,
            out_shape=jax.ShapeDtypeStruct((plan.b_pad, out_dim), out_dtype),
            grid_spec=pltpu.PrefetchScalarGridSpec(
                num_scalar_prefetch=0,
                grid=(nbt, nkt),
                in_specs=[
                    pl.BlockSpec((plan.tb, plan.tk), lambda i, k: (i, k)),     # x
                    pl.BlockSpec((plan.tk, hid_dim), lambda i, k: (k, 0)),     # W1
                    const((1, hid_dim), lambda i, k: (0, 0)),                  # b1
                    const((hid_dim, out_dim), lambda i, k: (0, 0)),            # W2
                    const((1, out_dim), lambda i, k: (0, 0)),                  # b2
                ],
                out_specs=pl.BlockSpec((plan.tb, out_dim), lambda i, k: (i, 0)),
                scratch_shapes=[pltpu.VMEM((plan.tb, hid_dim), jnp.float32)],
            ),
            compiler_params=pltpu.CompilerParams(
                dimension_semantics=plan.dims,
                vmem_limit_bytes=plan.vmem_limit),
            cost_estimate=_cost_estimate(B, start_dim, hid_dim, out_dim,
                                         act_bytes, w_bytes, nbt),
        )(x, w1p, b1r, w2, b2r)

    try:
        y = _run(True)       # single-buffer the constant-index W2/b1/b2
    except Exception:        # pipeline_mode=Buffered(1) unsupported -> plain specs
        y = _run(False)

    return y[:B] if plan.b_pad != B else y


def fmri_clip_2fc_loss(fmri, clip_vec, w1, b1, w2, b2, temperature=0.5, *,
                       tb=None, tk=None):
    """return_loss=True, loss_type='contrastive' path, fused: the MLP and the
    per-row cosine logits are computed in one kernel (y_pred never hits HBM);
    the B-length softmax/mean reduction runs in the wrapper."""
    B, start_dim = fmri.shape
    hid_dim = w1.shape[1]
    out_dim = w2.shape[1]
    assert clip_vec.shape == (B, out_dim)
    act_bytes = jnp.dtype(fmri.dtype).itemsize
    w_bytes = jnp.dtype(w1.dtype).itemsize

    plan = _plan(B, start_dim, hid_dim, out_dim, act_bytes, w_bytes,
                 with_y=True, tb=tb, tk=tk)
    nbt = plan.b_pad // plan.tb
    nkt = plan.k_pad // plan.tk

    x, y, w1p = fmri, clip_vec, w1
    if plan.b_pad != B:
        x = jnp.pad(x, ((0, plan.b_pad - B), (0, 0)))
        y = jnp.pad(y, ((0, plan.b_pad - B), (0, 0)))
    if plan.k_pad != start_dim:
        x = jnp.pad(x, ((0, 0), (0, plan.k_pad - start_dim)))
        w1p = jnp.pad(w1, ((0, plan.k_pad - start_dim), (0, 0)))
    b1r = jnp.asarray(b1).reshape(1, hid_dim)
    b2r = jnp.asarray(b2).reshape(1, out_dim)

    kern = functools.partial(_two_fc_cos_kernel,
                             inv_temperature=1.0 / float(temperature))

    def _run(single_buffer_consts):
        const = _const_spec_factory(single_buffer_consts)
        return pl.pallas_call(
            kern,
            out_shape=jax.ShapeDtypeStruct((plan.b_pad, 128), jnp.float32),
            grid_spec=pltpu.PrefetchScalarGridSpec(
                num_scalar_prefetch=0,
                grid=(nbt, nkt),
                in_specs=[
                    pl.BlockSpec((plan.tb, plan.tk), lambda i, k: (i, k)),     # x
                    pl.BlockSpec((plan.tb, out_dim), lambda i, k: (i, 0)),     # y (clip vec)
                    pl.BlockSpec((plan.tk, hid_dim), lambda i, k: (k, 0)),     # W1
                    const((1, hid_dim), lambda i, k: (0, 0)),                  # b1
                    const((hid_dim, out_dim), lambda i, k: (0, 0)),            # W2
                    const((1, out_dim), lambda i, k: (0, 0)),                  # b2
                ],
                out_specs=pl.BlockSpec((plan.tb, 128), lambda i, k: (i, 0)),
                scratch_shapes=[pltpu.VMEM((plan.tb, hid_dim), jnp.float32),
                                pltpu.VMEM((plan.tb, 1), jnp.float32)],
            ),
            compiler_params=pltpu.CompilerParams(
                dimension_semantics=plan.dims,
                vmem_limit_bytes=plan.vmem_limit),
            cost_estimate=_cost_estimate(B, start_dim, hid_dim, out_dim,
                                         act_bytes, w_bytes, nbt,
                                         transcendentals=B),
        )(x, y, w1p, b1r, w2, b2r)

    try:
        z_slab = _run(True)
    except Exception:
        z_slab = _run(False)

    z = z_slab[:B, 0]                                    # (B,) cos_sim / T; pad rows dropped
    # mean(-log_softmax(z, axis=0)) == logsumexp(z) - mean(z); tiny B-length reduce.
    m = jnp.max(z)
    return m + jnp.log(jnp.sum(jnp.exp(z - m))) - jnp.mean(z)


# ---------------------------------------------------------------------------
# Parameter init / one-time precision cast
# ---------------------------------------------------------------------------
def init_params(key, start_dim, hid_dim, out_dim=512, dtype=jnp.float32):
    k1, k2, k3, k4 = jax.random.split(key, 4)
    bound1 = 1.0 / jnp.sqrt(start_dim)
    bound2 = 1.0 / jnp.sqrt(hid_dim)
    w1 = jax.random.uniform(k1, (start_dim, hid_dim), dtype, -bound1, bound1)
    b1 = jax.random.uniform(k2, (1, hid_dim),        dtype, -bound1, bound1)
    w2 = jax.random.uniform(k3, (hid_dim, out_dim),  dtype, -bound2, bound2)
    b2 = jax.random.uniform(k4, (1, out_dim),        dtype, -bound2, bound2)
    return w1, b1, w2, b2


def cast_params(params, dtype=jnp.bfloat16):
    """One-time weight cast for the bf16 MXU fast path.  Do this OUTSIDE the
    per-step hot path -- casting inside the wrapper would re-read all of W1
    from HBM and write a copy back on every call.  Biases stay f32 (they are
    added in f32 inside the kernel anyway)."""
    w1, b1, w2, b2 = params
    return w1.astype(dtype), b1, w2.astype(dtype), b2


# ---------------------------------------------------------------------------
# Demo / correctness checks
# ---------------------------------------------------------------------------
if __name__ == "__main__":
    B, start_dim, hid_dim, out_dim = 8, 256, 128, 512
    temperature = 0.5

    key = jax.random.PRNGKey(0)
    k_fmri, k_clip, k_params = jax.random.split(key, 3)

    fmri = jax.random.normal(k_fmri, (B, start_dim), jnp.float32)    # x['fmri']
    clip_img = jax.random.normal(k_clip, (B, out_dim), jnp.float32)  # x['clip_img']
    w1, b1, w2, b2 = init_params(k_params, start_dim, hid_dim, out_dim)

    def ref_forward(x, w1_, b1_, w2_, b2_):
        return (x @ w1_ + b1_) @ w2_ + b2_

    def ref_loss(x, y, w1_, b1_, w2_, b2_, T):
        yp = ref_forward(x, w1_, b1_, w2_, b2_)
        cos = jnp.sum(y * yp, axis=1) / (jnp.linalg.norm(y, axis=1)
                                         * jnp.linalg.norm(yp, axis=1))
        return jnp.mean(-jax.nn.log_softmax(cos / T, axis=0))

    # return_loss=False path (f32)
    y_pred = jax.block_until_ready(fmri_clip_2fc_forward(fmri, w1, b1, w2, b2))
    # return_loss=True, loss_type='contrastive' path (fused, f32)
    loss = jax.block_until_ready(
        fmri_clip_2fc_loss(fmri, clip_img, w1, b1, w2, b2, temperature))

    y_ref = ref_forward(fmri, w1, b1, w2, b2)
    loss_ref = ref_loss(fmri, clip_img, w1, b1, w2, b2, temperature)
    assert jnp.allclose(y_pred, y_ref, atol=1e-4, rtol=1e-4)
    assert jnp.allclose(loss, loss_ref, atol=1e-4, rtol=1e-4)

    # bf16 MXU fast path (v5e/v6e/v7x): weights pre-cast ONCE outside the hot path
    w1b, b1b, w2b, b2b = cast_params((w1, b1, w2, b2), jnp.bfloat16)
    y_pred_bf16 = jax.block_until_ready(
        fmri_clip_2fc_forward(fmri, w1b, b1b, w2b, b2b))
    loss_bf16 = jax.block_until_ready(
        fmri_clip_2fc_loss(fmri, clip_img, w1b, b1b, w2b, b2b, temperature))
    assert jnp.allclose(y_pred_bf16, y_ref, atol=5e-2, rtol=5e-2)
    assert jnp.allclose(loss_bf16, loss_ref, atol=5e-2, rtol=5e-2)

    # Tiled + padded path: awkward B / start_dim with explicit tile overrides
    # (exercises the K-reduction accumulator, batch tiling and zero-pad/slice).
    B2, D2 = 20, 200
    f2 = jax.random.normal(jax.random.PRNGKey(1), (B2, D2), jnp.float32)
    c2 = jax.random.normal(jax.random.PRNGKey(2), (B2, out_dim), jnp.float32)
    w1_2, b1_2, w2_2, b2_2 = init_params(jax.random.PRNGKey(3), D2, hid_dim, out_dim)
    y2 = jax.block_until_ready(
        fmri_clip_2fc_forward(f2, w1_2, b1_2, w2_2, b2_2, tb=8, tk=128))
    l2 = jax.block_until_ready(
        fmri_clip_2fc_loss(f2, c2, w1_2, b1_2, w2_2, b2_2, temperature, tb=8, tk=128))
    assert jnp.allclose(y2, ref_forward(f2, w1_2, b1_2, w2_2, b2_2),
                        atol=1e-4, rtol=1e-4)
    assert jnp.allclose(l2, ref_loss(f2, c2, w1_2, b1_2, w2_2, b2_2, temperature),
                        atol=1e-4, rtol=1e-4)

    print("KERNEL_OK")
</pallas_src>

<mosaic_0001>
module attributes {stable_mosaic.version = 11 : i64} {
  func.func @_two_fc_kernel(%arg0: i32, %arg1: i32, %arg2: memref<8x256xf32, #tpu.memory_space<vmem>>, %arg3: memref<256x128xf32, #tpu.memory_space<vmem>>, %arg4: memref<1x128xf32, #tpu.memory_space<vmem>>, %arg5: memref<128x512xf32, #tpu.memory_space<vmem>>, %arg6: memref<1x512xf32, #tpu.memory_space<vmem>>, %arg7: memref<8x512xf32, #tpu.memory_space<vmem>>, %arg8: memref<8x128xf32, #tpu.memory_space<vmem>>) attributes {dimension_semantics = [#tpu.dimension_semantics<arbitrary>, #tpu.dimension_semantics<arbitrary>], iteration_bounds = array<i64: 1, 1>, scalar_prefetch = 0 : i64, scratch_operands = 1 : i64, tpu.core_type = #tpu.core_type<tc>, window_params = [{transform_indices = @transform_0, window_bounds = array<i64: 8, 256>}, {transform_indices = @transform_1, window_bounds = array<i64: 256, 128>}, {pipeline_mode = #tpu.pipeline_mode<synchronous>, transform_indices = @transform_2, window_bounds = array<i64: 1, 128>}, {pipeline_mode = #tpu.pipeline_mode<synchronous>, transform_indices = @transform_3, window_bounds = array<i64: 128, 512>}, {pipeline_mode = #tpu.pipeline_mode<synchronous>, transform_indices = @transform_4, window_bounds = array<i64: 1, 512>}, {transform_indices = @transform_5, window_bounds = array<i64: 8, 512>}]} {
    %c0_i32 = arith.constant 0 : i32
    %0 = arith.cmpi eq, %arg1, %c0_i32 : i32
    %1 = arith.extui %0 : i1 to i32
    %c0_i32_0 = arith.constant 0 : i32
    %2 = arith.cmpi ne, %1, %c0_i32_0 : i32
    scf.if %2 {
      %cst_10 = arith.constant 0.000000e+00 : f32
      %12 = vector.broadcast %cst_10 : f32 to vector<8x128xf32>
      %c0_11 = arith.constant 0 : index
      %c0_12 = arith.constant 0 : index
      %13 = vector.load %arg8[%c0_11, %c0_12] : memref<8x128xf32, #tpu.memory_space<vmem>>, vector<8x128xf32>
      tpu.vector_store %arg8[%c0_11, %c0_12], %12 {strides = array<i32>} : memref<8x128xf32, #tpu.memory_space<vmem>>, vector<8x128xf32>,
    } else {
    }
    %c0 = arith.constant 0 : index
    %c0_1 = arith.constant 0 : index
    %3 = vector.load %arg8[%c0, %c0_1] : memref<8x128xf32, #tpu.memory_space<vmem>>, vector<8x128xf32>
    %c0_2 = arith.constant 0 : index
    %c0_3 = arith.constant 0 : index
    %4 = vector.load %arg2[%c0_2, %c0_3] : memref<8x256xf32, #tpu.memory_space<vmem>>, vector<8x256xf32>
    %c0_4 = arith.constant 0 : index
    %c0_5 = arith.constant 0 : index
    %5 = vector.load %arg3[%c0_4, %c0_5] : memref<256x128xf32, #tpu.memory_space<vmem>>, vector<256x128xf32>
    %cst = arith.constant dense<0.000000e+00> : vector<8x128xf32>
    %6 = tpu.matmul %4, %5, %cst {dimension_numbers = #tpu.dot_dimension_numbers<[1], [0], [0], [1], [0, 0, 1, 1], [], []>} : vector<8x256xf32>, vector<256x128xf32>, vector<8x128xf32> -> vector<8x128xf32>
    %7 = arith.addf %3, %6 : vector<8x128xf32>
    %c0_6 = arith.constant 0 : index
    %c0_7 = arith.constant 0 : index
    %8 = vector.load %arg8[%c0_6, %c0_7] : memref<8x128xf32, #tpu.memory_space<vmem>>, vector<8x128xf32>
    tpu.vector_store %arg8[%c0_6, %c0_7], %7 {strides = array<i32>} : memref<8x128xf32, #tpu.memory_space<vmem>>, vector<8x128xf32>,
    %c0_i32_8 = arith.constant 0 : i32
    %9 = arith.cmpi eq, %arg1, %c0_i32_8 : i32
    %10 = arith.extui %9 : i1 to i32
    %c0_i32_9 = arith.constant 0 : i32
    %11 = arith.cmpi ne, %10, %c0_i32_9 : i32
    scf.if %11 {
      %c0_10 = arith.constant 0 : index
      %c0_11 = arith.constant 0 : index
      %12 = vector.load %arg8[%c0_10, %c0_11] : memref<8x128xf32, #tpu.memory_space<vmem>>, vector<8x128xf32>
      %c0_12 = arith.constant 0 : index
      %c0_13 = arith.constant 0 : index
      %13 = vector.load %arg4[%c0_12, %c0_13] : memref<1x128xf32, #tpu.memory_space<vmem>>, vector<1x128xf32>
      %14 = vector.broadcast %13 : vector<1x128xf32> to vector<8x128xf32>
      %15 = arith.addf %12, %14 : vector<8x128xf32>
      %c0_14 = arith.constant 0 : index
      %c0_15 = arith.constant 0 : index
      %16 = vector.load %arg5[%c0_14, %c0_15] : memref<128x512xf32, #tpu.memory_space<vmem>>, vector<128x512xf32>
      %cst_16 = arith.constant dense<0.000000e+00> : vector<8x512xf32>
      %17 = tpu.matmul %15, %16, %cst_16 {dimension_numbers = #tpu.dot_dimension_numbers<[1], [0], [0], [1], [0, 0, 1, 1], [], []>} : vector<8x128xf32>, vector<128x512xf32>, vector<8x512xf32> -> vector<8x512xf32>
      %c0_17 = arith.constant 0 : index
      %c0_18 = arith.constant 0 : index
      %18 = vector.load %arg6[%c0_17, %c0_18] : memref<1x512xf32, #tpu.memory_space<vmem>>, vector<1x512xf32>
      %19 = vector.broadcast %18 : vector<1x512xf32> to vector<8x512xf32>
      %20 = arith.addf %17, %19 : vector<8x512xf32>
      %c0_19 = arith.constant 0 : index
      %c0_20 = arith.constant 0 : index
      %21 = vector.load %arg7[%c0_19, %c0_20] : memref<8x512xf32, #tpu.memory_space<vmem>>, vector<8x512xf32>
      tpu.vector_store %arg7[%c0_19, %c0_20], %20 {strides = array<i32>} : memref<8x512xf32, #tpu.memory_space<vmem>>, vector<8x512xf32>,
    } else {
    }
    return
  }
  func.func @transform_0(%arg0: i32, %arg1: i32) -> (i32, i32) {
    %c0_i32 = arith.constant 0 : i32
    return %arg0, %arg1 : i32, i32
  }
  func.func @transform_1(%arg0: i32, %arg1: i32) -> (i32, i32) {
    %c0_i32 = arith.constant 0 : i32
    %c0_i32_0 = arith.constant 0 : i32
    return %arg1, %c0_i32 : i32, i32
  }
  func.func @transform_2(%arg0: i32, %arg1: i32) -> (i32, i32) {
    %c0_i32 = arith.constant 0 : i32
    %c0_i32_0 = arith.constant 0 : i32
    %c0_i32_1 = arith.constant 0 : i32
    return %c0_i32, %c0_i32_0 : i32, i32
  }
  func.func @transform_3(%arg0: i32, %arg1: i32) -> (i32, i32) {
    %c0_i32 = arith.constant 0 : i32
    %c0_i32_0 = arith.constant 0 : i32
    %c0_i32_1 = arith.constant 0 : i32
    return %c0_i32, %c0_i32_0 : i32, i32
  }
  func.func @transform_4(%arg0: i32, %arg1: i32) -> (i32, i32) {
    %c0_i32 = arith.constant 0 : i32
    %c0_i32_0 = arith.constant 0 : i32
    %c0_i32_1 = arith.constant 0 : i32
    return %c0_i32, %c0_i32_0 : i32, i32
  }
  func.func @transform_5(%arg0: i32, %arg1: i32) -> (i32, i32) {
    %c0_i32 = arith.constant 0 : i32
    %c0_i32_0 = arith.constant 0 : i32
    return %arg0, %c0_i32 : i32, i32
  }
}

module attributes {stable_mosaic.version = 11 : i64} {
  func.func @_two_fc_kernel(%arg0: i32, %arg1: i32, %arg2: memref<8x256xf32, #tpu.memory_space<vmem>>, %arg3: memref<256x128xf32, #tpu.memory_space<vmem>>, %arg4: memref<1x128xf32, #tpu.memory_space<vmem>>, %arg5: memref<128x512xf32, #tpu.memory_space<vmem>>, %arg6: memref<1x512xf32, #tpu.memory_space<vmem>>, %arg7: memref<8x512xf32, #tpu.memory_space<vmem>>, %arg8: memref<8x128xf32, #tpu.memory_space<vmem>>) attributes {dimension_semantics = [#tpu.dimension_semantics<arbitrary>, #tpu.dimension_semantics<arbitrary>], iteration_bounds = array<i64: 1, 1>, scalar_prefetch = 0 : i64, scratch_operands = 1 : i64, tpu.core_type = #tpu.core_type<tc>, window_params = [{transform_indices = @transform_0, window_bounds = array<i64: 8, 256>}, {transform_indices = @transform_1, window_bounds = array<i64: 256, 128>}, {pipeline_mode = #tpu.pipeline_mode<synchronous>, transform_indices = @transform_2, window_bounds = array<i64: 1, 128>}, {pipeline_mode = #tpu.pipeline_mode<synchronous>, transform_indices = @transform_3, window_bounds = array<i64: 128, 512>}, {pipeline_mode = #tpu.pipeline_mode<synchronous>, transform_indices = @transform_4, window_bounds = array<i64: 1, 512>}, {transform_indices = @transform_5, window_bounds = array<i64: 8, 512>}]} {
    %c0_i32 = arith.constant 0 : i32
    %0 = arith.cmpi eq, %arg1, %c0_i32 : i32
    %1 = arith.extui %0 : i1 to i32
    %c0_i32_0 = arith.constant 0 : i32
    %2 = arith.cmpi ne, %1, %c0_i32_0 : i32
    scf.if %2 {
      %cst_10 = arith.constant 0.000000e+00 : f32
      %12 = vector.broadcast %cst_10 : f32 to vector<8x128xf32>
      %c0_11 = arith.constant 0 : index
      %c0_12 = arith.constant 0 : index
      %13 = vector.load %arg8[%c0_11, %c0_12] : memref<8x128xf32, #tpu.memory_space<vmem>>, vector<8x128xf32>
      tpu.vector_store %arg8[%c0_11, %c0_12], %12 {strides = array<i32>} : memref<8x128xf32, #tpu.memory_space<vmem>>, vector<8x128xf32>,
    } else {
    }
    %c0 = arith.constant 0 : index
    %c0_1 = arith.constant 0 : index
    %3 = vector.load %arg8[%c0, %c0_1] : memref<8x128xf32, #tpu.memory_space<vmem>>, vector<8x128xf32>
    %c0_2 = arith.constant 0 : index
    %c0_3 = arith.constant 0 : index
    %4 = vector.load %arg2[%c0_2, %c0_3] : memref<8x256xf32, #tpu.memory_space<vmem>>, vector<8x256xf32>
    %c0_4 = arith.constant 0 : index
    %c0_5 = arith.constant 0 : index
    %5 = vector.load %arg3[%c0_4, %c0_5] : memref<256x128xf32, #tpu.memory_space<vmem>>, vector<256x128xf32>
    %cst = arith.constant dense<0.000000e+00> : vector<8x128xf32>
    %6 = tpu.matmul %4, %5, %cst {dimension_numbers = #tpu.dot_dimension_numbers<[1], [0], [0], [1], [0, 0, 1, 1], [], []>} : vector<8x256xf32>, vector<256x128xf32>, vector<8x128xf32> -> vector<8x128xf32>
    %7 = arith.addf %3, %6 : vector<8x128xf32>
    %c0_6 = arith.constant 0 : index
    %c0_7 = arith.constant 0 : index
    %8 = vector.load %arg8[%c0_6, %c0_7] : memref<8x128xf32, #tpu.memory_space<vmem>>, vector<8x128xf32>
    tpu.vector_store %arg8[%c0_6, %c0_7], %7 {strides = array<i32>} : memref<8x128xf32, #tpu.memory_space<vmem>>, vector<8x128xf32>,
    %c0_i32_8 = arith.constant 0 : i32
    %9 = arith.cmpi eq, %arg1, %c0_i32_8 : i32
    %10 = arith.extui %9 : i1 to i32
    %c0_i32_9 = arith.constant 0 : i32
    %11 = arith.cmpi ne, %10, %c0_i32_9 : i32
    scf.if %11 {
      %c0_10 = arith.constant 0 : index
      %c0_11 = arith.constant 0 : index
      %12 = vector.load %arg8[%c0_10, %c0_11] : memref<8x128xf32, #tpu.memory_space<vmem>>, vector<8x128xf32>
      %c0_12 = arith.constant 0 : index
      %c0_13 = arith.constant 0 : index
      %13 = vector.load %arg4[%c0_12, %c0_13] : memref<1x128xf32, #tpu.memory_space<vmem>>, vector<1x128xf32>
      %14 = vector.broadcast %13 : vector<1x128xf32> to vector<8x128xf32>
      %15 = arith.addf %12, %14 : vector<8x128xf32>
      %c0_14 = arith.constant 0 : index
      %c0_15 = arith.constant 0 : index
      %16 = vector.load %arg5[%c0_14, %c0_15] : memref<128x512xf32, #tpu.memory_space<vmem>>, vector<128x512xf32>
      %cst_16 = arith.constant dense<0.000000e+00> : vector<8x512xf32>
      %17 = tpu.matmul %15, %16, %cst_16 {dimension_numbers = #tpu.dot_dimension_numbers<[1], [0], [0], [1], [0, 0, 1, 1], [], []>} : vector<8x128xf32>, vector<128x512xf32>, vector<8x512xf32> -> vector<8x512xf32>
      %c0_17 = arith.constant 0 : index
      %c0_18 = arith.constant 0 : index
      %18 = vector.load %arg6[%c0_17, %c0_18] : memref<1x512xf32, #tpu.memory_space<vmem>>, vector<1x512xf32>
      %19 = vector.broadcast %18 : vector<1x512xf32> to vector<8x512xf32>
      %20 = arith.addf %17, %19 : vector<8x512xf32>
      %c0_19 = arith.constant 0 : index
      %c0_20 = arith.constant 0 : index
      %21 = vector.load %arg7[%c0_19, %c0_20] : memref<8x512xf32, #tpu.memory_space<vmem>>, vector<8x512xf32>
      tpu.vector_store %arg7[%c0_19, %c0_20], %20 {strides = array<i32>} : memref<8x512xf32, #tpu.memory_space<vmem>>, vector<8x512xf32>,
    } else {
    }
    return
  }
  func.func @transform_0(%arg0: i32, %arg1: i32) -> (i32, i32) {
    %c0_i32 = arith.constant 0 : i32
    return %arg0, %arg1 : i32, i32
  }
  func.func @transform_1(%arg0: i32, %arg1: i32) -> (i32, i32) {
    %c0_i32 = arith.constant 0 : i32
    %c0_i32_0 = arith.constant 0 : i32
    return %arg1, %c0_i32 : i32, i32
  }
  func.func @transform_2(%arg0: i32, %arg1: i32) -> (i32, i32) {
    %c0_i32 = arith.constant 0 : i32
    %c0_i32_0 = arith.constant 0 : i32
    %c0_i32_1 = arith.constant 0 : i32
    return %c0_i32, %c0_i32_0 : i32, i32
  }
  func.func @transform_3(%arg0: i32, %arg1: i32) -> (i32, i32) {
    %c0_i32 = arith.constant 0 : i32
    %c0_i32_0 = arith.constant 0 : i32
    %c0_i32_1 = arith.constant 0 : i32
    return %c0_i32, %c0_i32_0 : i32, i32
  }
  func.func @transform_4(%arg0: i32, %arg1: i32) -> (i32, i32) {
    %c0_i32 = arith.constant 0 : i32
    %c0_i32_0 = arith.constant 0 : i32
    %c0_i32_1 = arith.constant 0 : i32
    return %c0_i32, %c0_i32_0 : i32, i32
  }
  func.func @transform_5(%arg0: i32, %arg1: i32) -> (i32, i32) {
    %c0_i32 = arith.constant 0 : i32
    %c0_i32_0 = arith.constant 0 : i32
    return %arg0, %c0_i32 : i32, i32
  }
}

</mosaic_0001>

<bundles_post_ra>
// kernel: tpu_custom_call.1
= control target key start
LH: loop header
LB: loop body
LE: loop exit
PB: predicated region body
PF: predicated region fallthrough
CT: control target
= control target key end

     0   :  { %10 = vsyncpa [#allocation4], 0  ;;  %s543_s0 = inlined_call_operand.hbm [shape: f32[8,256], index: 0, kind: input, shape index: {}]   ;;  %s544_s1 = inlined_call_operand.hbm [shape: f32[256,128], index: 1, kind: input, shape index: {}]   ;;  %s545_s2 = inlined_call_operand.vmem [shape: f32[1,128], index: 2, kind: input, shape index: {}]   ;;  %s546_s3 = inlined_call_operand.hbm [shape: f32[128,512], index: 3, kind: input, shape index: {}]   ;;  %s547_s4 = inlined_call_operand.hbm [shape: f32[1,512], index: 4, kind: input, shape index: {}]   ;;  %s548_s5 = inlined_call_operand.hbm [shape: f32[8,512], index: 5, kind: output, shape index: {}]  }
   0x1   :  { %11 = vsyncpa [#allocation7], 0 }
   0x2   :  { %12 = vsyncpa [#allocation10], 0  ;;  %s29_s20 = sshll.u32 %s544_s1, 4  ;;  %s30_s20 = int_to_ptr.hbm [resolvable:$true] %s29_s20 }
   0x3   :  { %13 = vsyncpa [#allocation5], 0  ;;  %s486_s21 = smov [#allocation6]   ;;  %s19_s25 = sshll.u32 %s543_s0, 4  ;;  %s20_s25 = int_to_ptr.hbm [resolvable:$true] %s19_s25 }
   0x4   :  { %s31_s22 = sshll.u32 %s486_s21, 4  ;;  %s487_s26 = smov 128   ;;  %s32_s22 = int_to_ptr.vmem [resolvable:$true] %s31_s22 }
   0x5   :  { %s488_s27 = smov 8   ;;  %s489_s28 = smov [#allocation3]  }
   0x6   :  { %37 = dma.hbm_to_vmem [thread:$0]  %s30_s20, 4096, %s32_s22, [#allocation7], %s487_s26, %s487_s26, %s488_s27  }
   0x7   :  { %s21_s29 = sshll.u32 %s489_s28, 4  ;;  %s44_s7 = sshll.u32 %s546_s3, 4  ;;  %s22_s29 = int_to_ptr.vmem [resolvable:$true] %s21_s29  ;;  %s45_s7 = int_to_ptr.hbm [resolvable:$true] %s44_s7 }
   0x8   :  { %24 = dma.hbm_to_vmem [thread:$0]  %s20_s25, 256, %s22_s29, [#allocation4]  }
   0x9   :  { %s490_s1 = smov [#allocation8]   ;;  %s58_s0 = sshll.u32 %s547_s4, 4  ;;  %s59_s0 = int_to_ptr.hbm [resolvable:$true] %s58_s0 }
   0xa   :  { %s46_s8 = sshll.u32 %s490_s1, 4  ;;  %s491_s11 = smov 512   ;;  %s47_s8 = int_to_ptr.vmem [resolvable:$true] %s46_s8 }
   0xb   :  { %s492_s12 = smov 32   ;;  %s493_s13 = smov [#allocation9]  }
   0xc   :  { %52 = dma.hbm_to_vmem [thread:$0]  %s45_s7, 8192, %s47_s8, [#allocation7], %s491_s11, %s491_s11, %s492_s12  }
   0xd   :  { %s60_s14 = sshll.u32 %s493_s13, 4  ;;  %s61_s14 = int_to_ptr.vmem [resolvable:$true] %s60_s14 }
   0xe   :  { %63 = dma.hbm_to_vmem [thread:$0]  %s59_s0, 64, %s61_s14, [#allocation10]  }
   0xf   :  { %478 = dma.done.wait [#allocation4], 256  }
  0x10   :  { %479 = vsyncadd [#allocation4], 4294967040 }
  0x11   :  { %480 = dma.done.wait [#allocation7], 12288  }
  0x12   :  { %481 = vsyncadd [#allocation7], 4294955008 }
  0x13   :  { %482 = dma.done.wait [#allocation10], 64  }
  0x14   :  { %483 = vsyncadd [#allocation10], 4294967232  ;;  %v103_v0 = vld [vmem:[#allocation6 + $0x78] sm:$0xff]  ;;  %v102_v2 = vld [vmem:[#allocation6 + $0x70] sm:$0xff]  ;;  %s336_s18 = sshll.u32 %s548_s5, 4  ;;  %s337_s18 = int_to_ptr.hbm [resolvable:$true] %s336_s18 }
  0x15   :  { %v119_v1 = vld [vmem:[#allocation6 + $0xf8] sm:$0xff]  ;;  %120 = vmatpush.msra.mxu0 %v103_v0  ;;  %v118_v3 = vld [vmem:[#allocation6 + $0xf0] sm:$0xff]  ;;  %v101_v4 = vld [vmem:[#allocation6 + $0x68] sm:$0xff] }
  0x16   :  { %140 = vmatpush.msra.mxu1 %v119_v1  ;;  %v117_v5 = vld [vmem:[#allocation6 + $0xe8] sm:$0xff]  ;;  %v100_v6 = vld [vmem:[#allocation6 + $0x60] sm:$0xff]  ;;  %v99_v8 = vld [vmem:[#allocation6 + $0x58] sm:$0xff] }
  0x17   :  { %121 = vmatpush.msra.mxu0 %v102_v2  ;;  %v116_v7 = vld [vmem:[#allocation6 + $0xe0] sm:$0xff]  ;;  %v115_v9 = vld [vmem:[#allocation6 + $0xd8] sm:$0xff]  ;;  %v98_v10 = vld [vmem:[#allocation6 + $0x50] sm:$0xff] }
  0x18   :  { %141 = vmatpush.msra.mxu1 %v118_v3  ;;  %v114_v11 = vld [vmem:[#allocation6 + $0xd0] sm:$0xff]  ;;  %v97_v12 = vld [vmem:[#allocation6 + $0x48] sm:$0xff]  ;;  %v231_v14 = vld [vmem:[#allocation8 + $0x1e0] sm:$0xff] }
  0x19   :  { %122 = vmatpush.msra.mxu0 %v101_v4  ;;  %v113_v13 = vld [vmem:[#allocation6 + $0xc8] sm:$0xff]  ;;  %v96_v16 = vld [vmem:[#allocation6 + $0x40] sm:$0xff]  ;;  %245 = vmatpush.msra.mxu2 %v231_v14  ;;  %v95_v19 = vld [vmem:[#allocation6 + $0x38] sm:$0xff] }
  0x1a   :  { %142 = vmatpush.msra.mxu1 %v117_v5  ;;  %v232_v15 = vld [vmem:[#allocation8 + $0x1e8] sm:$0xff]  ;;  %v112_v17 = vld [vmem:[#allocation6 + $0xc0] sm:$0xff]  ;;  %v111_v21 = vld [vmem:[#allocation6 + $0xb8] sm:$0xff] }
  0x1b   :  { %123 = vmatpush.msra.mxu0 %v100_v6  ;;  %265 = vmatpush.msra.mxu3 %v232_v15  ;;  %v227_v18 = vld [vmem:[#allocation8 + $0x1c0] sm:$0xff]  ;;  %v228_v20 = vld [vmem:[#allocation8 + $0x1c8] sm:$0xff]  ;;  %v94_v26 = vld [vmem:[#allocation6 + $0x30] sm:$0xff] }
  0x1c   :  { %143 = vmatpush.msra.mxu1 %v116_v7  ;;  %246 = vmatpush.msra.mxu2 %v227_v18  ;;  %v223_v22 = vld [vmem:[#allocation8 + $0x1a0] sm:$0xff]  ;;  %v224_v23 = vld [vmem:[#allocation8 + $0x1a8] sm:$0xff]  ;;  %v110_v27 = vld [vmem:[#allocation6 + $0xb0] sm:$0xff] }
  0x1d   :  { %124 = vmatpush.msra.mxu0 %v99_v8  ;;  %266 = vmatpush.msra.mxu3 %v228_v20  ;;  %v219_v24 = vld [vmem:[#allocation8 + $0x180] sm:$0xff]  ;;  %v220_v25 = vld [vmem:[#allocation8 + $0x188] sm:$0xff]  ;;  %v91_v38 = vld [vmem:[#allocation6 + $0x18] sm:$0xff] }
  0x1e   :  { %144 = vmatpush.msra.mxu1 %v115_v9  ;;  %247 = vmatpush.msra.mxu2 %v223_v22  ;;  %v215_v28 = vld [vmem:[#allocation8 + $0x160] sm:$0xff]  ;;  %v216_v29 = vld [vmem:[#allocation8 + $0x168] sm:$0xff]  ;;  %v107_v39 = vld [vmem:[#allocation6 + $0x98] sm:$0xff] }
  0x1f   :  { %125 = vmatpush.msra.mxu0 %v98_v10  ;;  %267 = vmatpush.msra.mxu3 %v224_v23  ;;  %v93_v30 = vld [vmem:[#allocation6 + $0x28] sm:$0xff]  ;;  %v211_v32 = vld [vmem:[#allocation8 + $0x140] sm:$0xff]  ;;  %v90_v42 = vld [vmem:[#allocation6 + $0x10] sm:$0xff] }
  0x20   :  { %145 = vmatpush.msra.mxu1 %v114_v11  ;;  %v109_v31 = vld [vmem:[#allocation6 + $0xa8] sm:$0xff]  ;;  %248 = vmatpush.msra.mxu2 %v219_v24  ;;  %v92_v34 = vld [vmem:[#allocation6 + $0x20] sm:$0xff]  ;;  %v106_v43 = vld [vmem:[#allocation6 + $0x90] sm:$0xff] }
  0x21   :  { %126 = vmatpush.msra.mxu0 %v97_v12  ;;  %268 = vmatpush.msra.mxu3 %v220_v25  ;;  %v212_v33 = vld [vmem:[#allocation8 + $0x148] sm:$0xff]  ;;  %v108_v35 = vld [vmem:[#allocation6 + $0xa0] sm:$0xff]  ;;  %v86_v52 = vld [vmem:[#allocation3] sm:$0xff] }
  0x22   :  { %146 = vmatpush.msra.mxu1 %v113_v13  ;;  %249 = vmatpush.msra.mxu2 %v215_v28  ;;  %v207_v36 = vld [vmem:[#allocation8 + $0x120] sm:$0xff]  ;;  %v208_v37 = vld [vmem:[#allocation8 + $0x128] sm:$0xff]  ;;  %v87_v53 = vld [vmem:[#allocation3 + $0x8] sm:$0xff] }
  0x23   :  { %127 = vmatpush.msra.mxu0 %v96_v16  ;;  %269 = vmatpush.msra.mxu3 %v216_v29  ;;  %v203_v40 = vld [vmem:[#allocation8 + $0x100] sm:$0xff]  ;;  %v204_v41 = vld [vmem:[#allocation8 + $0x108] sm:$0xff]  ;;  %v233_v54 = vld [vmem:[#allocation8 + $0x1f0] sm:$0xff] }
  0x24   :  { %147 = vmatpush.msra.mxu1 %v112_v17  ;;  %250 = vmatpush.msra.mxu2 %v211_v32  ;;  %v199_v44 = vld [vmem:[#allocation8 + $0xe0] sm:$0xff]  ;;  %v200_v45 = vld [vmem:[#allocation8 + $0xe8] sm:$0xff]  ;;  %v234_v55 = vld [vmem:[#allocation8 + $0x1f8] sm:$0xff] }
  0x25   :  { %128 = vmatpush.msra.mxu0 %v95_v19  ;;  %270 = vmatpush.msra.mxu3 %v212_v33  ;;  %v89_v46 = vld [vmem:[#allocation6 + $0x8] sm:$0xff]  ;;  %v195_v48 = vld [vmem:[#allocation8 + $0xc0] sm:$0xff]  ;;  %v229_v58 = vld [vmem:[#allocation8 + $0x1d0] sm:$0xff] }
  0x26   :  { %148 = vmatpush.msra.mxu1 %v111_v21  ;;  %251 = vmatpush.msra.mxu2 %v207_v36  ;;  %v105_v47 = vld [vmem:[#allocation6 + $0x88] sm:$0xff]  ;;  %v88_v50 = vld [vmem:[#allocation6] sm:$0xff]  ;;  %v230_v59 = vld [vmem:[#allocation8 + $0x1d8] sm:$0xff] }
  0x27   :  { %129 = vmatpush.msra.mxu0 %v94_v26  ;;  %271 = vmatpush.msra.mxu3 %v208_v37  ;;  %v196_v49 = vld [vmem:[#allocation8 + $0xc8] sm:$0xff]  ;;  %v104_v51 = vld [vmem:[#allocation6 + $0x80] sm:$0xff]  ;;  %v225_v62 = vld [vmem:[#allocation8 + $0x1b0] sm:$0xff] }
  0x28   :  { %149 = vmatpush.msra.mxu1 %v110_v27  ;;  %252 = vmatpush.msra.mxu2 %v203_v40  ;;  %v191_v56 = vld [vmem:[#allocation8 + $0xa0] sm:$0xff]  ;;  %v192_v57 = vld [vmem:[#allocation8 + $0xa8] sm:$0xff]  ;;  %v226_v63 = vld [vmem:[#allocation8 + $0x1b8] sm:$0xff] }
  0x29   :  { %130 = vmatpush.msra.mxu0 %v93_v30  ;;  %272 = vmatpush.msra.mxu3 %v204_v41  ;;  %v187_v60 = vld [vmem:[#allocation8 + $0x80] sm:$0xff]  ;;  %v188_v61 = vld [vmem:[#allocation8 + $0x88] sm:$0xff]  ;;  %v221_v2 = vld [vmem:[#allocation8 + $0x190] sm:$0xff] }
  0x2a   :  { %150 = vmatpush.msra.mxu1 %v109_v31  ;;  %253 = vmatpush.msra.mxu2 %v199_v44  ;;  %v183_v0 = vld [vmem:[#allocation8 + $0x60] sm:$0xff]  ;;  %v184_v1 = vld [vmem:[#allocation8 + $0x68] sm:$0xff]  ;;  %v222_v3 = vld [vmem:[#allocation8 + $0x198] sm:$0xff] }
  0x2b   :  { %131 = vmatpush.msra.mxu0 %v92_v34  ;;  %273 = vmatpush.msra.mxu3 %v200_v45  ;;  %v217_v4 = vld [vmem:[#allocation8 + $0x170] sm:$0xff]  ;;  %v218_v5 = vld [vmem:[#allocation8 + $0x178] sm:$0xff]  ;;  %v179_v22 = vld [vmem:[#allocation8 + $0x40] sm:$0xff] }
  0x2c   :  { %151 = vmatpush.msra.mxu1 %v108_v35  ;;  %254 = vmatpush.msra.mxu2 %v195_v48  ;;  %v213_v6 = vld [vmem:[#allocation8 + $0x150] sm:$0xff]  ;;  %v214_v7 = vld [vmem:[#allocation8 + $0x158] sm:$0xff]  ;;  %v180_v23 = vld [vmem:[#allocation8 + $0x48] sm:$0xff] }
  0x2d   :  { %132 = vmatpush.msra.mxu0 %v91_v38  ;;  %274 = vmatpush.msra.mxu3 %v196_v49  ;;  %v209_v8 = vld [vmem:[#allocation8 + $0x130] sm:$0xff]  ;;  %v210_v9 = vld [vmem:[#allocation8 + $0x138] sm:$0xff]  ;;  %v175_v26 = vld [vmem:[#allocation8 + $0x20] sm:$0xff] }
  0x2e   :  { %152 = vmatpush.msra.mxu1 %v107_v39  ;;  %255 = vmatpush.msra.mxu2 %v191_v56  ;;  %v205_v10 = vld [vmem:[#allocation8 + $0x110] sm:$0xff]  ;;  %v206_v11 = vld [vmem:[#allocation8 + $0x118] sm:$0xff]  ;;  %v176_v27 = vld [vmem:[#allocation8 + $0x28] sm:$0xff] }
  0x2f   :  { %133 = vmatpush.msra.mxu0 %v90_v42  ;;  %275 = vmatpush.msra.mxu3 %v192_v57  ;;  %v201_v12 = vld [vmem:[#allocation8 + $0xf0] sm:$0xff]  ;;  %v202_v13 = vld [vmem:[#allocation8 + $0xf8] sm:$0xff]  ;;  %v171_v30 = vld [vmem:[#allocation8] sm:$0xff] }
  0x30   :  { %153 = vmatpush.msra.mxu1 %v106_v43  ;;  %256 = vmatpush.msra.mxu2 %v187_v60  ;;  %v197_v14 = vld [vmem:[#allocation8 + $0xd0] sm:$0xff]  ;;  %v198_v15 = vld [vmem:[#allocation8 + $0xd8] sm:$0xff]  ;;  %v172_v31 = vld [vmem:[#allocation8 + $0x8] sm:$0xff] }
  0x31   :  { %134 = vmatpush.msra.mxu0 %v89_v46  ;;  %276 = vmatpush.msra.mxu3 %v188_v61  ;;  %v193_v16 = vld [vmem:[#allocation8 + $0xb0] sm:$0xff]  ;;  %v194_v17 = vld [vmem:[#allocation8 + $0xb8] sm:$0xff]  ;;  %v235_v39 = vld [vmem:[#allocation9] sm:$0xf] }
  0x32   :  { %154 = vmatpush.msra.mxu1 %v105_v47  ;;  %257 = vmatpush.msra.mxu2 %v183_v0  ;;  %v189_v18 = vld [vmem:[#allocation8 + $0x90] sm:$0xff]  ;;  %v190_v19 = vld [vmem:[#allocation8 + $0x98] sm:$0xff]  ;;  %v239_v40 = vperm.slane %v235_v39, 2  ;;  %v240_v41 = vperm.slane %v235_v39, 3  ;;  %v237_v46 = vperm.slane %v235_v39, 0  ;;  %v238_v47 = vperm.slane %v235_v39, 1 }
  0x33   :  { %135 = vmatpush.msra.mxu0 %v88_v50  ;;  %277 = vmatpush.msra.mxu3 %v184_v1  ;;  %v185_v20 = vld [vmem:[#allocation8 + $0x70] sm:$0xff]  ;;  %v186_v21 = vld [vmem:[#allocation8 + $0x78] sm:$0xff] }
  0x34   :  { %155 = vmatpush.msra.mxu1 %v104_v51  ;;  %136 = vmatmul.f32.vlgmr.msra.gmra.mxu0 %v86_v52  ;;  %v181_v24 = vld [vmem:[#allocation8 + $0x50] sm:$0xff]  ;;  %v182_v25 = vld [vmem:[#allocation8 + $0x58] sm:$0xff] }
  0x35   :  { %156 = vmatmul.f32.vlgmr.msra.gmra.mxu1 %v87_v53  ;;  %285 = vmatpush.msrb.mxu0 %v233_v54  ;;  %v177_v28 = vld [vmem:[#allocation8 + $0x30] sm:$0xff]  ;;  %v178_v29 = vld [vmem:[#allocation8 + $0x38] sm:$0xff] }
  0x36   :  { %305 = vmatpush.msrb.mxu1 %v234_v55  ;;  %258 = vmatpush.msra.mxu2 %v179_v22  ;;  %v173_v32 = vld [vmem:[#allocation8 + $0x10] sm:$0xff]  ;;  %v174_v33 = vld [vmem:[#allocation8 + $0x18] sm:$0xff] }
  0x37   :  { %286 = vmatpush.msrb.mxu0 %v229_v58  ;;  %278 = vmatpush.msra.mxu3 %v180_v23  ;;  %v357_v34 = vld [vmem:[%s545_s2] ss:$0 sm:$0xff]  ;;  %s494_s2 = smov [#allocation11]  }
  0x38   :  { %306 = vmatpush.msrb.mxu1 %v230_v59  ;;  %259 = vmatpush.msra.mxu2 %v175_v26  ;;  %s334_s15 = sshll.u32 %s494_s2, 4  ;;  %s335_s15 = int_to_ptr.vmem [resolvable:$true] %s334_s15 }
  0x39   :  { %287 = vmatpush.msrb.mxu0 %v225_v62  ;;  %279 = vmatpush.msra.mxu3 %v176_v27 }
  0x3a   :  { %307 = vmatpush.msrb.mxu1 %v226_v63  ;;  %260 = vmatpush.msra.mxu2 %v171_v30 }
  0x3b   :  { %288 = vmatpush.msrb.mxu0 %v221_v2  ;;  %280 = vmatpush.msra.mxu3 %v172_v31 }
  0x3c   :  { %308 = vmatpush.msrb.mxu1 %v222_v3 }
  0x3d   :  { %289 = vmatpush.msrb.mxu0 %v217_v4 }
  0x3e   :  { %309 = vmatpush.msrb.mxu1 %v218_v5 }
  0x3f   :  { %290 = vmatpush.msrb.mxu0 %v213_v6 }
  0x40   :  { %310 = vmatpush.msrb.mxu1 %v214_v7 }
  0x41   :  { %291 = vmatpush.msrb.mxu0 %v209_v8 }
  0x42   :  { %311 = vmatpush.msrb.mxu1 %v210_v9 }
  0x43   :  { %292 = vmatpush.msrb.mxu0 %v205_v10 }
  0x44   :  { %312 = vmatpush.msrb.mxu1 %v206_v11 }
  0x45   :  { %293 = vmatpush.msrb.mxu0 %v201_v12 }
  0x46   :  { %313 = vmatpush.msrb.mxu1 %v202_v13 }
  0x47   :  { %294 = vmatpush.msrb.mxu0 %v197_v14 }
  0x48   :  { %314 = vmatpush.msrb.mxu1 %v198_v15 }
  0x49   :  { %295 = vmatpush.msrb.mxu0 %v193_v16 }
  0x4a   :  { %315 = vmatpush.msrb.mxu1 %v194_v17 }
  0x4b   :  { %296 = vmatpush.msrb.mxu0 %v189_v18 }
  0x4c   :  { %316 = vmatpush.msrb.mxu1 %v190_v19 }
  0x4d   :  { %297 = vmatpush.msrb.mxu0 %v185_v20 }
  0x4e   :  { %317 = vmatpush.msrb.mxu1 %v186_v21 }
  0x4f   :  { %298 = vmatpush.msrb.mxu0 %v181_v24 }
  0x50   :  { %318 = vmatpush.msrb.mxu1 %v182_v25 }
  0x51   :  { %299 = vmatpush.msrb.mxu0 %v177_v28 }
  0x52   :  { %319 = vmatpush.msrb.mxu1 %v178_v29 }
  0x53   :  { %300 = vmatpush.msrb.mxu0 %v173_v32 }
  0x54   :  { %320 = vmatpush.msrb.mxu1 %v174_v33 }
  0xb1   :  { %v137_v35 = vpop.f32.mrf.mxu0 }
  0xb2   :  { %v157_v36 = vpop.f32.mrf.mxu1 }
  0xb3   :  { %v158_v37 = vadd.f32 %v157_v36, %v137_v35 }
  0xb5   :  { %v170_v38 = vadd.f32 %v357_v34, %v158_v37 }
  0xb7   :  { %261 = vmatmul.f32.vlgmr.msra.gmra.mxu2 %v170_v38  ;;  %281 = vmatmul.f32.vlgmr.msra.gmra.mxu3 %v170_v38 }
  0xb8   :  { %301 = vmatmul.f32.vlgmr.msrb.gmra.mxu0 %v170_v38  ;;  %321 = vmatmul.f32.vlgmr.msrb.gmra.mxu1 %v170_v38 }
 0x135   :  { %v302_v42 = vpop.f32.mrf.mxu0  ;;  %v322_v43 = vpop.f32.mrf.mxu1 }
 0x136   :  { %v303_v44 = vadd.f32 %v302_v42, %v239_v40  ;;  %v323_v45 = vadd.f32 %v322_v43, %v240_v41 }
 0x138   :  { %327 = vst [vmem:[#allocation11 + $0x10] sm:$0xff] %v303_v44 }
 0x139   :  { %328 = vst [vmem:[#allocation11 + $0x18] sm:$0xff] %v323_v45 }
 0x13a   :  { %v262_v48 = vpop.f32.mrf.mxu2  ;;  %v282_v49 = vpop.f32.mrf.mxu3 }
 0x13b   :  { %v263_v50 = vadd.f32 %v262_v48, %v237_v46  ;;  %v283_v51 = vadd.f32 %v282_v49, %v238_v47 }
 0x13d   :  { %325 = vst [vmem:[#allocation11] sm:$0xff] %v263_v50 }
 0x13e   :  { %326 = vst [vmem:[#allocation11 + $0x8] sm:$0xff] %v283_v51 }
 0x13f   :  { %339 = dma.vmem_to_hbm [thread:$0]  %s335_s15, 512, %s337_s18, [#allocation5]  }
 0x140   :  { %484 = dma.done.wait [#allocation5], 512  }
 0x141   :  { %485 = vsyncadd [#allocation5], 4294966784 }
 0x142   :  { %344 = vsyncpa [#allocation4], 1 }
 0x143   :  { %345 = vsyncpa [#allocation7], 1 }
 0x144   :  { %346 = vsyncpa [#allocation10], 1 }
 0x145   :  { %347 = vsyncpa [#allocation5], 1 }

// kernel: tpu_custom_call.1
= control target key start
LH: loop header
LB: loop body
LE: loop exit
PB: predicated region body
PF: predicated region fallthrough
CT: control target
= control target key end

     0   :  { %10 = vsyncpa [#allocation4], 0  ;;  %s543_s0 = inlined_call_operand.hbm [shape: f32[8,256], index: 0, kind: input, shape index: {}]   ;;  %s544_s1 = inlined_call_operand.hbm [shape: f32[256,128], index: 1, kind: input, shape index: {}]   ;;  %s545_s2 = inlined_call_operand.vmem [shape: f32[1,128], index: 2, kind: input, shape index: {}]   ;;  %s546_s3 = inlined_call_operand.hbm [shape: f32[128,512], index: 3, kind: input, shape index: {}]   ;;  %s547_s4 = inlined_call_operand.hbm [shape: f32[1,512], index: 4, kind: input, shape index: {}]   ;;  %s548_s5 = inlined_call_operand.hbm [shape: f32[8,512], index: 5, kind: output, shape index: {}]  }
   0x1   :  { %11 = vsyncpa [#allocation7], 0 }
   0x2   :  { %12 = vsyncpa [#allocation10], 0  ;;  %s29_s20 = sshll.u32 %s544_s1, 4  ;;  %s30_s20 = int_to_ptr.hbm [resolvable:$true] %s29_s20 }
   0x3   :  { %13 = vsyncpa [#allocation5], 0  ;;  %s486_s21 = smov [#allocation6]   ;;  %s19_s25 = sshll.u32 %s543_s0, 4  ;;  %s20_s25 = int_to_ptr.hbm [resolvable:$true] %s19_s25 }
   0x4   :  { %s31_s22 = sshll.u32 %s486_s21, 4  ;;  %s487_s26 = smov 128   ;;  %s32_s22 = int_to_ptr.vmem [resolvable:$true] %s31_s22 }
   0x5   :  { %s488_s27 = smov 8   ;;  %s489_s28 = smov [#allocation3]  }
   0x6   :  { %37 = dma.hbm_to_vmem [thread:$0]  %s30_s20, 4096, %s32_s22, [#allocation7], %s487_s26, %s487_s26, %s488_s27  }
   0x7   :  { %s21_s29 = sshll.u32 %s489_s28, 4  ;;  %s44_s7 = sshll.u32 %s546_s3, 4  ;;  %s22_s29 = int_to_ptr.vmem [resolvable:$true] %s21_s29  ;;  %s45_s7 = int_to_ptr.hbm [resolvable:$true] %s44_s7 }
   0x8   :  { %24 = dma.hbm_to_vmem [thread:$0]  %s20_s25, 256, %s22_s29, [#allocation4]  }
   0x9   :  { %s490_s1 = smov [#allocation8]   ;;  %s58_s0 = sshll.u32 %s547_s4, 4  ;;  %s59_s0 = int_to_ptr.hbm [resolvable:$true] %s58_s0 }
   0xa   :  { %s46_s8 = sshll.u32 %s490_s1, 4  ;;  %s491_s11 = smov 512   ;;  %s47_s8 = int_to_ptr.vmem [resolvable:$true] %s46_s8 }
   0xb   :  { %s492_s12 = smov 32   ;;  %s493_s13 = smov [#allocation9]  }
   0xc   :  { %52 = dma.hbm_to_vmem [thread:$0]  %s45_s7, 8192, %s47_s8, [#allocation7], %s491_s11, %s491_s11, %s492_s12  }
   0xd   :  { %s60_s14 = sshll.u32 %s493_s13, 4  ;;  %s61_s14 = int_to_ptr.vmem [resolvable:$true] %s60_s14 }
   0xe   :  { %63 = dma.hbm_to_vmem [thread:$0]  %s59_s0, 64, %s61_s14, [#allocation10]  }
   0xf   :  { %478 = dma.done.wait [#allocation4], 256  }
  0x10   :  { %479 = vsyncadd [#allocation4], 4294967040 }
  0x11   :  { %480 = dma.done.wait [#allocation7], 12288  }
  0x12   :  { %481 = vsyncadd [#allocation7], 4294955008 }
  0x13   :  { %482 = dma.done.wait [#allocation10], 64  }
  0x14   :  { %483 = vsyncadd [#allocation10], 4294967232  ;;  %v103_v0 = vld [vmem:[#allocation6 + $0x78] sm:$0xff]  ;;  %v102_v2 = vld [vmem:[#allocation6 + $0x70] sm:$0xff]  ;;  %s336_s18 = sshll.u32 %s548_s5, 4  ;;  %s337_s18 = int_to_ptr.hbm [resolvable:$true] %s336_s18 }
  0x15   :  { %v119_v1 = vld [vmem:[#allocation6 + $0xf8] sm:$0xff]  ;;  %120 = vmatpush.msra.mxu0 %v103_v0  ;;  %v118_v3 = vld [vmem:[#allocation6 + $0xf0] sm:$0xff]  ;;  %v101_v4 = vld [vmem:[#allocation6 + $0x68] sm:$0xff] }
  0x16   :  { %140 = vmatpush.msra.mxu1 %v119_v1  ;;  %v117_v5 = vld [vmem:[#allocation6 + $0xe8] sm:$0xff]  ;;  %v100_v6 = vld [vmem:[#allocation6 + $0x60] sm:$0xff]  ;;  %v99_v8 = vld [vmem:[#allocation6 + $0x58] sm:$0xff] }
  0x17   :  { %121 = vmatpush.msra.mxu0 %v102_v2  ;;  %v116_v7 = vld [vmem:[#allocation6 + $0xe0] sm:$0xff]  ;;  %v115_v9 = vld [vmem:[#allocation6 + $0xd8] sm:$0xff]  ;;  %v98_v10 = vld [vmem:[#allocation6 + $0x50] sm:$0xff] }
  0x18   :  { %141 = vmatpush.msra.mxu1 %v118_v3  ;;  %v114_v11 = vld [vmem:[#allocation6 + $0xd0] sm:$0xff]  ;;  %v97_v12 = vld [vmem:[#allocation6 + $0x48] sm:$0xff]  ;;  %v231_v14 = vld [vmem:[#allocation8 + $0x1e0] sm:$0xff] }
  0x19   :  { %122 = vmatpush.msra.mxu0 %v101_v4  ;;  %v113_v13 = vld [vmem:[#allocation6 + $0xc8] sm:$0xff]  ;;  %v96_v16 = vld [vmem:[#allocation6 + $0x40] sm:$0xff]  ;;  %245 = vmatpush.msra.mxu2 %v231_v14  ;;  %v95_v19 = vld [vmem:[#allocation6 + $0x38] sm:$0xff] }
  0x1a   :  { %142 = vmatpush.msra.mxu1 %v117_v5  ;;  %v232_v15 = vld [vmem:[#allocation8 + $0x1e8] sm:$0xff]  ;;  %v112_v17 = vld [vmem:[#allocation6 + $0xc0] sm:$0xff]  ;;  %v111_v21 = vld [vmem:[#allocation6 + $0xb8] sm:$0xff] }
  0x1b   :  { %123 = vmatpush.msra.mxu0 %v100_v6  ;;  %265 = vmatpush.msra.mxu3 %v232_v15  ;;  %v227_v18 = vld [vmem:[#allocation8 + $0x1c0] sm:$0xff]  ;;  %v228_v20 = vld [vmem:[#allocation8 + $0x1c8] sm:$0xff]  ;;  %v94_v26 = vld [vmem:[#allocation6 + $0x30] sm:$0xff] }
  0x1c   :  { %143 = vmatpush.msra.mxu1 %v116_v7  ;;  %246 = vmatpush.msra.mxu2 %v227_v18  ;;  %v223_v22 = vld [vmem:[#allocation8 + $0x1a0] sm:$0xff]  ;;  %v224_v23 = vld [vmem:[#allocation8 + $0x1a8] sm:$0xff]  ;;  %v110_v27 = vld [vmem:[#allocation6 + $0xb0] sm:$0xff] }
  0x1d   :  { %124 = vmatpush.msra.mxu0 %v99_v8  ;;  %266 = vmatpush.msra.mxu3 %v228_v20  ;;  %v219_v24 = vld [vmem:[#allocation8 + $0x180] sm:$0xff]  ;;  %v220_v25 = vld [vmem:[#allocation8 + $0x188] sm:$0xff]  ;;  %v91_v38 = vld [vmem:[#allocation6 + $0x18] sm:$0xff] }
  0x1e   :  { %144 = vmatpush.msra.mxu1 %v115_v9  ;;  %247 = vmatpush.msra.mxu2 %v223_v22  ;;  %v215_v28 = vld [vmem:[#allocation8 + $0x160] sm:$0xff]  ;;  %v216_v29 = vld [vmem:[#allocation8 + $0x168] sm:$0xff]  ;;  %v107_v39 = vld [vmem:[#allocation6 + $0x98] sm:$0xff] }
  0x1f   :  { %125 = vmatpush.msra.mxu0 %v98_v10  ;;  %267 = vmatpush.msra.mxu3 %v224_v23  ;;  %v93_v30 = vld [vmem:[#allocation6 + $0x28] sm:$0xff]  ;;  %v211_v32 = vld [vmem:[#allocation8 + $0x140] sm:$0xff]  ;;  %v90_v42 = vld [vmem:[#allocation6 + $0x10] sm:$0xff] }
  0x20   :  { %145 = vmatpush.msra.mxu1 %v114_v11  ;;  %v109_v31 = vld [vmem:[#allocation6 + $0xa8] sm:$0xff]  ;;  %248 = vmatpush.msra.mxu2 %v219_v24  ;;  %v92_v34 = vld [vmem:[#allocation6 + $0x20] sm:$0xff]  ;;  %v106_v43 = vld [vmem:[#allocation6 + $0x90] sm:$0xff] }
  0x21   :  { %126 = vmatpush.msra.mxu0 %v97_v12  ;;  %268 = vmatpush.msra.mxu3 %v220_v25  ;;  %v212_v33 = vld [vmem:[#allocation8 + $0x148] sm:$0xff]  ;;  %v108_v35 = vld [vmem:[#allocation6 + $0xa0] sm:$0xff]  ;;  %v86_v52 = vld [vmem:[#allocation3] sm:$0xff] }
  0x22   :  { %146 = vmatpush.msra.mxu1 %v113_v13  ;;  %249 = vmatpush.msra.mxu2 %v215_v28  ;;  %v207_v36 = vld [vmem:[#allocation8 + $0x120] sm:$0xff]  ;;  %v208_v37 = vld [vmem:[#allocation8 + $0x128] sm:$0xff]  ;;  %v87_v53 = vld [vmem:[#allocation3 + $0x8] sm:$0xff] }
  0x23   :  { %127 = vmatpush.msra.mxu0 %v96_v16  ;;  %269 = vmatpush.msra.mxu3 %v216_v29  ;;  %v203_v40 = vld [vmem:[#allocation8 + $0x100] sm:$0xff]  ;;  %v204_v41 = vld [vmem:[#allocation8 + $0x108] sm:$0xff]  ;;  %v233_v54 = vld [vmem:[#allocation8 + $0x1f0] sm:$0xff] }
  0x24   :  { %147 = vmatpush.msra.mxu1 %v112_v17  ;;  %250 = vmatpush.msra.mxu2 %v211_v32  ;;  %v199_v44 = vld [vmem:[#allocation8 + $0xe0] sm:$0xff]  ;;  %v200_v45 = vld [vmem:[#allocation8 + $0xe8] sm:$0xff]  ;;  %v234_v55 = vld [vmem:[#allocation8 + $0x1f8] sm:$0xff] }
  0x25   :  { %128 = vmatpush.msra.mxu0 %v95_v19  ;;  %270 = vmatpush.msra.mxu3 %v212_v33  ;;  %v89_v46 = vld [vmem:[#allocation6 + $0x8] sm:$0xff]  ;;  %v195_v48 = vld [vmem:[#allocation8 + $0xc0] sm:$0xff]  ;;  %v229_v58 = vld [vmem:[#allocation8 + $0x1d0] sm:$0xff] }
  0x26   :  { %148 = vmatpush.msra.mxu1 %v111_v21  ;;  %251 = vmatpush.msra.mxu2 %v207_v36  ;;  %v105_v47 = vld [vmem:[#allocation6 + $0x88] sm:$0xff]  ;;  %v88_v50 = vld [vmem:[#allocation6] sm:$0xff]  ;;  %v230_v59 = vld [vmem:[#allocation8 + $0x1d8] sm:$0xff] }
  0x27   :  { %129 = vmatpush.msra.mxu0 %v94_v26  ;;  %271 = vmatpush.msra.mxu3 %v208_v37  ;;  %v196_v49 = vld [vmem:[#allocation8 + $0xc8] sm:$0xff]  ;;  %v104_v51 = vld [vmem:[#allocation6 + $0x80] sm:$0xff]  ;;  %v225_v62 = vld [vmem:[#allocation8 + $0x1b0] sm:$0xff] }
  0x28   :  { %149 = vmatpush.msra.mxu1 %v110_v27  ;;  %252 = vmatpush.msra.mxu2 %v203_v40  ;;  %v191_v56 = vld [vmem:[#allocation8 + $0xa0] sm:$0xff]  ;;  %v192_v57 = vld [vmem:[#allocation8 + $0xa8] sm:$0xff]  ;;  %v226_v63 = vld [vmem:[#allocation8 + $0x1b8] sm:$0xff] }
  0x29   :  { %130 = vmatpush.msra.mxu0 %v93_v30  ;;  %272 = vmatpush.msra.mxu3 %v204_v41  ;;  %v187_v60 = vld [vmem:[#allocation8 + $0x80] sm:$0xff]  ;;  %v188_v61 = vld [vmem:[#allocation8 + $0x88] sm:$0xff]  ;;  %v221_v2 = vld [vmem:[#allocation8 + $0x190] sm:$0xff] }
  0x2a   :  { %150 = vmatpush.msra.mxu1 %v109_v31  ;;  %253 = vmatpush.msra.mxu2 %v199_v44  ;;  %v183_v0 = vld [vmem:[#allocation8 + $0x60] sm:$0xff]  ;;  %v184_v1 = vld [vmem:[#allocation8 + $0x68] sm:$0xff]  ;;  %v222_v3 = vld [vmem:[#allocation8 + $0x198] sm:$0xff] }
  0x2b   :  { %131 = vmatpush.msra.mxu0 %v92_v34  ;;  %273 = vmatpush.msra.mxu3 %v200_v45  ;;  %v217_v4 = vld [vmem:[#allocation8 + $0x170] sm:$0xff]  ;;  %v218_v5 = vld [vmem:[#allocation8 + $0x178] sm:$0xff]  ;;  %v179_v22 = vld [vmem:[#allocation8 + $0x40] sm:$0xff] }
  0x2c   :  { %151 = vmatpush.msra.mxu1 %v108_v35  ;;  %254 = vmatpush.msra.mxu2 %v195_v48  ;;  %v213_v6 = vld [vmem:[#allocation8 + $0x150] sm:$0xff]  ;;  %v214_v7 = vld [vmem:[#allocation8 + $0x158] sm:$0xff]  ;;  %v180_v23 = vld [vmem:[#allocation8 + $0x48] sm:$0xff] }
  0x2d   :  { %132 = vmatpush.msra.mxu0 %v91_v38  ;;  %274 = vmatpush.msra.mxu3 %v196_v49  ;;  %v209_v8 = vld [vmem:[#allocation8 + $0x130] sm:$0xff]  ;;  %v210_v9 = vld [vmem:[#allocation8 + $0x138] sm:$0xff]  ;;  %v175_v26 = vld [vmem:[#allocation8 + $0x20] sm:$0xff] }
  0x2e   :  { %152 = vmatpush.msra.mxu1 %v107_v39  ;;  %255 = vmatpush.msra.mxu2 %v191_v56  ;;  %v205_v10 = vld [vmem:[#allocation8 + $0x110] sm:$0xff]  ;;  %v206_v11 = vld [vmem:[#allocation8 + $0x118] sm:$0xff]  ;;  %v176_v27 = vld [vmem:[#allocation8 + $0x28] sm:$0xff] }
  0x2f   :  { %133 = vmatpush.msra.mxu0 %v90_v42  ;;  %275 = vmatpush.msra.mxu3 %v192_v57  ;;  %v201_v12 = vld [vmem:[#allocation8 + $0xf0] sm:$0xff]  ;;  %v202_v13 = vld [vmem:[#allocation8 + $0xf8] sm:$0xff]  ;;  %v171_v30 = vld [vmem:[#allocation8] sm:$0xff] }
  0x30   :  { %153 = vmatpush.msra.mxu1 %v106_v43  ;;  %256 = vmatpush.msra.mxu2 %v187_v60  ;;  %v197_v14 = vld [vmem:[#allocation8 + $0xd0] sm:$0xff]  ;;  %v198_v15 = vld [vmem:[#allocation8 + $0xd8] sm:$0xff]  ;;  %v172_v31 = vld [vmem:[#allocation8 + $0x8] sm:$0xff] }
  0x31   :  { %134 = vmatpush.msra.mxu0 %v89_v46  ;;  %276 = vmatpush.msra.mxu3 %v188_v61  ;;  %v193_v16 = vld [vmem:[#allocation8 + $0xb0] sm:$0xff]  ;;  %v194_v17 = vld [vmem:[#allocation8 + $0xb8] sm:$0xff]  ;;  %v235_v39 = vld [vmem:[#allocation9] sm:$0xf] }
  0x32   :  { %154 = vmatpush.msra.mxu1 %v105_v47  ;;  %257 = vmatpush.msra.mxu2 %v183_v0  ;;  %v189_v18 = vld [vmem:[#allocation8 + $0x90] sm:$0xff]  ;;  %v190_v19 = vld [vmem:[#allocation8 + $0x98] sm:$0xff]  ;;  %v239_v40 = vperm.slane %v235_v39, 2  ;;  %v240_v41 = vperm.slane %v235_v39, 3  ;;  %v237_v46 = vperm.slane %v235_v39, 0  ;;  %v238_v47 = vperm.slane %v235_v39, 1 }
  0x33   :  { %135 = vmatpush.msra.mxu0 %v88_v50  ;;  %277 = vmatpush.msra.mxu3 %v184_v1  ;;  %v185_v20 = vld [vmem:[#allocation8 + $0x70] sm:$0xff]  ;;  %v186_v21 = vld [vmem:[#allocation8 + $0x78] sm:$0xff] }
  0x34   :  { %155 = vmatpush.msra.mxu1 %v104_v51  ;;  %136 = vmatmul.f32.vlgmr.msra.gmra.mxu0 %v86_v52  ;;  %v181_v24 = vld [vmem:[#allocation8 + $0x50] sm:$0xff]  ;;  %v182_v25 = vld [vmem:[#allocation8 + $0x58] sm:$0xff] }
  0x35   :  { %156 = vmatmul.f32.vlgmr.msra.gmra.mxu1 %v87_v53  ;;  %285 = vmatpush.msrb.mxu0 %v233_v54  ;;  %v177_v28 = vld [vmem:[#allocation8 + $0x30] sm:$0xff]  ;;  %v178_v29 = vld [vmem:[#allocation8 + $0x38] sm:$0xff] }
  0x36   :  { %305 = vmatpush.msrb.mxu1 %v234_v55  ;;  %258 = vmatpush.msra.mxu2 %v179_v22  ;;  %v173_v32 = vld [vmem:[#allocation8 + $0x10] sm:$0xff]  ;;  %v174_v33 = vld [vmem:[#allocation8 + $0x18] sm:$0xff] }
  0x37   :  { %286 = vmatpush.msrb.mxu0 %v229_v58  ;;  %278 = vmatpush.msra.mxu3 %v180_v23  ;;  %v357_v34 = vld [vmem:[%s545_s2] ss:$0 sm:$0xff]  ;;  %s494_s2 = smov [#allocation11]  }
  0x38   :  { %306 = vmatpush.msrb.mxu1 %v230_v59  ;;  %259 = vmatpush.msra.mxu2 %v175_v26  ;;  %s334_s15 = sshll.u32 %s494_s2, 4  ;;  %s335_s15 = int_to_ptr.vmem [resolvable:$true] %s334_s15 }
  0x39   :  { %287 = vmatpush.msrb.mxu0 %v225_v62  ;;  %279 = vmatpush.msra.mxu3 %v176_v27 }
  0x3a   :  { %307 = vmatpush.msrb.mxu1 %v226_v63  ;;  %260 = vmatpush.msra.mxu2 %v171_v30 }
  0x3b   :  { %288 = vmatpush.msrb.mxu0 %v221_v2  ;;  %280 = vmatpush.msra.mxu3 %v172_v31 }
  0x3c   :  { %308 = vmatpush.msrb.mxu1 %v222_v3 }
  0x3d   :  { %289 = vmatpush.msrb.mxu0 %v217_v4 }
  0x3e   :  { %309 = vmatpush.msrb.mxu1 %v218_v5 }
  0x3f   :  { %290 = vmatpush.msrb.mxu0 %v213_v6 }
  0x40   :  { %310 = vmatpush.msrb.mxu1 %v214_v7 }
  0x41   :  { %291 = vmatpush.msrb.mxu0 %v209_v8 }
  0x42   :  { %311 = vmatpush.msrb.mxu1 %v210_v9 }
  0x43   :  { %292 = vmatpush.msrb.mxu0 %v205_v10 }
  0x44   :  { %312 = vmatpush.msrb.mxu1 %v206_v11 }
  0x45   :  { %293 = vmatpush.msrb.mxu0 %v201_v12 }
  0x46   :  { %313 = vmatpush.msrb.mxu1 %v202_v13 }
  0x47   :  { %294 = vmatpush.msrb.mxu0 %v197_v14 }
  0x48   :  { %314 = vmatpush.msrb.mxu1 %v198_v15 }
  0x49   :  { %295 = vmatpush.msrb.mxu0 %v193_v16 }
  0x4a   :  { %315 = vmatpush.msrb.mxu1 %v194_v17 }
  0x4b   :  { %296 = vmatpush.msrb.mxu0 %v189_v18 }
  0x4c   :  { %316 = vmatpush.msrb.mxu1 %v190_v19 }
  0x4d   :  { %297 = vmatpush.msrb.mxu0 %v185_v20 }
  0x4e   :  { %317 = vmatpush.msrb.mxu1 %v186_v21 }
  0x4f   :  { %298 = vmatpush.msrb.mxu0 %v181_v24 }
  0x50   :  { %318 = vmatpush.msrb.mxu1 %v182_v25 }
  0x51   :  { %299 = vmatpush.msrb.mxu0 %v177_v28 }
  0x52   :  { %319 = vmatpush.msrb.mxu1 %v178_v29 }
  0x53   :  { %300 = vmatpush.msrb.mxu0 %v173_v32 }
  0x54   :  { %320 = vmatpush.msrb.mxu1 %v174_v33 }
  0xb1   :  { %v137_v35 = vpop.f32.mrf.mxu0 }
  0xb2   :  { %v157_v36 = vpop.f32.mrf.mxu1 }
  0xb3   :  { %v158_v37 = vadd.f32 %v157_v36, %v137_v35 }
  0xb5   :  { %v170_v38 = vadd.f32 %v357_v34, %v158_v37 }
  0xb7   :  { %261 = vmatmul.f32.vlgmr.msra.gmra.mxu2 %v170_v38  ;;  %281 = vmatmul.f32.vlgmr.msra.gmra.mxu3 %v170_v38 }
  0xb8   :  { %301 = vmatmul.f32.vlgmr.msrb.gmra.mxu0 %v170_v38  ;;  %321 = vmatmul.f32.vlgmr.msrb.gmra.mxu1 %v170_v38 }
 0x135   :  { %v302_v42 = vpop.f32.mrf.mxu0  ;;  %v322_v43 = vpop.f32.mrf.mxu1 }
 0x136   :  { %v303_v44 = vadd.f32 %v302_v42, %v239_v40  ;;  %v323_v45 = vadd.f32 %v322_v43, %v240_v41 }
 0x138   :  { %327 = vst [vmem:[#allocation11 + $0x10] sm:$0xff] %v303_v44 }
 0x139   :  { %328 = vst [vmem:[#allocation11 + $0x18] sm:$0xff] %v323_v45 }
 0x13a   :  { %v262_v48 = vpop.f32.mrf.mxu2  ;;  %v282_v49 = vpop.f32.mrf.mxu3 }
 0x13b   :  { %v263_v50 = vadd.f32 %v262_v48, %v237_v46  ;;  %v283_v51 = vadd.f32 %v282_v49, %v238_v47 }
 0x13d   :  { %325 = vst [vmem:[#allocation11] sm:$0xff] %v263_v50 }
 0x13e   :  { %326 = vst [vmem:[#allocation11 + $0x8] sm:$0xff] %v283_v51 }
 0x13f   :  { %339 = dma.vmem_to_hbm [thread:$0]  %s335_s15, 512, %s337_s18, [#allocation5]  }
 0x140   :  { %484 = dma.done.wait [#allocation5], 512  }
 0x141   :  { %485 = vsyncadd [#allocation5], 4294966784 }
 0x142   :  { %344 = vsyncpa [#allocation4], 1 }
 0x143   :  { %345 = vsyncpa [#allocation7], 1 }
 0x144   :  { %346 = vsyncpa [#allocation10], 1 }
 0x145   :  { %347 = vsyncpa [#allocation5], 1 }

</bundles_post_ra>
